<compile_context>
chip_gen: v7x
topology: tpu7x:2x2x1
jax: 0.10.0
libtpu: 0.0.40
codegen_flags: <defaults>
</compile_context>

<pallas_src>
import functools

import jax
import jax.numpy as jnp
from jax import lax
from jax.experimental import pallas as pl
from jax.experimental.pallas import tpu as pltpu


def _round_up(v, m):
    return (v + m - 1) // m * m


def _convblock_kernel(x_ref, w_ref, b_ref, msk_ref, o_ref, sum_ref, ssq_ref, *,
                      inv_cnt, eps, slope):
    # x_ref  : (1, K, S_TILE)   bf16 lane-dense im2col tile, K = kh*kw*C_in
    # w_ref  : (OC, K)          bf16 fused weights
    # b_ref  : (OC, 1)          f32 bias
    # msk_ref: (S_TILE, 1)      f32 valid-lane column (0 on the padded tail lanes)
    # o_ref  : (1, OC, S_PAD)   sample-resident output block (revisited across the S axis)
    # sum_ref, ssq_ref : (OC,1) f32 running per-channel statistics (VMEM scratch)
    si = pl.program_id(1)
    n_s = pl.num_programs(1)
    s_tile = x_ref.shape[-1]

    @pl.when(si == 0)
    def _():
        sum_ref[...] = jnp.zeros_like(sum_ref)
        ssq_ref[...] = jnp.zeros_like(ssq_ref)

    # One big-K MXU matmul per spatial tile (replaces kh*kw per-tap K=C_in dots).
    acc = jnp.dot(w_ref[...], x_ref[0],
                  preferred_element_type=jnp.float32)          # (OC, S_TILE) f32

    # Per-channel sum / sum-of-squares on the MXU via the valid-lane mask column
    # (no y*msk elementwise pass, no cross-lane XLU reductions).  Stats use the
    # bias-free conv output: variance is shift-invariant and the mean is corrected
    # by +bias at the end.
    m = msk_ref[...]                                           # (S_TILE, 1) f32
    sum_ref[...] += jnp.dot(acc, m, preferred_element_type=jnp.float32)
    ssq_ref[...] += jnp.dot(acc * acc, m, preferred_element_type=jnp.float32)

    # Stage the pre-norm conv+bias tile into the resident output block; the store
    # offset is a multiple of 128, so stores stay lane-dense and unmasked.
    off = pl.multiple_of(si * s_tile, 128)
    o_ref[0, :, pl.ds(off, s_tile)] = (acc + b_ref[...]).astype(o_ref.dtype)

    # Last S step: InstanceNorm2d (biased variance, eps) + LeakyReLU over the whole sample.
    @pl.when(si == n_s - 1)
    def _():
        mean_c = sum_ref[...] * inv_cnt                        # (OC, 1) bias-free mean
        var = jnp.maximum(ssq_ref[...] * inv_cnt - mean_c * mean_c, 0.0)
        scale = lax.rsqrt(var + eps)
        mean_y = mean_c + b_ref[...]
        z = (o_ref[0].astype(jnp.float32) - mean_y) * scale
        o_ref[0] = jnp.maximum(z, slope * z).astype(o_ref.dtype)


@functools.partial(jax.jit, static_argnames=("stride", "s_tile"))
def conv_block_forward(x_nchw, weight_oihw, bias, *, stride, s_tile=None):
    """Forward pass equivalent to the PyTorch ConvBlock.  x_nchw: (N, C_in, H, W)."""
    n, c_in, h, w = x_nchw.shape
    oc, _, kh, kw = weight_oihw.shape
    s = stride

    # Reflect padding = 1 on both spatial dims (padding_mode='reflect'); bf16 MXU operands.
    xp = jnp.pad(x_nchw, ((0, 0), (0, 0), (1, 1), (1, 1)), mode="reflect").astype(jnp.bfloat16)
    hp, wp = h + 2, w + 2
    oh = (hp - kh) // s + 1
    ow = (wp - kw) // s + 1
    spatial = oh * ow

    # Lane geometry: spatial axis padded to a multiple of the (128-aligned) S tile.
    if s_tile is None:
        s_tile = min(512, _round_up(spatial, 128))
    assert s_tile % 128 == 0
    s_pad = _round_up(spatial, s_tile)
    n_s = s_pad // s_tile
    oc_pad = _round_up(oc, 8)
    k_dim = c_in * kh * kw

    # Lane-dense im2col:
    #   pat[b, c*kh*kw + ih*kw + iw, oy*ow + ox] = xp[b, c, s*oy + ih, s*ox + iw]
    # Padded tail lanes are zero, so they contribute exactly zero to the (bias-free) stats.
    taps = []
    for ih in range(kh):
        for iw in range(kw):
            taps.append(xp[:, :, ih:ih + s * (oh - 1) + 1:s, iw:iw + s * (ow - 1) + 1:s])
    pat = jnp.stack(taps, axis=2).reshape(n, k_dim, spatial)
    pat = jnp.pad(pat, ((0, 0), (0, 0), (0, s_pad - spatial)))

    w2 = jnp.pad(weight_oihw.reshape(oc, k_dim).astype(jnp.bfloat16),
                 ((0, oc_pad - oc), (0, 0)))
    b2 = jnp.pad(bias.astype(jnp.float32).reshape(oc, 1), ((0, oc_pad - oc), (0, 0)))
    msk = (jnp.arange(s_pad) < spatial).astype(jnp.float32).reshape(s_pad, 1)

    kernel = functools.partial(
        _convblock_kernel,
        inv_cnt=1.0 / float(spatial), eps=1e-5, slope=0.2,
    )

    out_bytes = n * oc_pad * s_pad * jnp.dtype(x_nchw.dtype).itemsize
    cost = pl.CostEstimate(
        flops=int(2 * n * oc_pad * k_dim * s_pad + 8 * n * oc_pad * s_pad),
        transcendentals=int(n * oc_pad),
        bytes_accessed=int(pat.size * 2 + w2.size * 2 + b2.size * 4 + msk.size * 4 + out_bytes),
    )

    out = pl.pallas_call(
        kernel,
        out_shape=jax.ShapeDtypeStruct((n, oc_pad, s_pad), x_nchw.dtype),
        grid_spec=pltpu.PrefetchScalarGridSpec(
            num_scalar_prefetch=0,
            grid=(n, n_s),
            in_specs=[
                # Patches: double-buffered (1, K, S_TILE) tiles along the spatial axis.
                pl.BlockSpec((1, k_dim, s_tile), lambda b, si: (b, 0, si)),
                # Weights / bias: constant block index -> fetched once, Pallas skips the
                # re-copy on revisits (tiny here; for huge layers consider pl.Buffered(1)).
                pl.BlockSpec((oc_pad, k_dim), lambda b, si: (0, 0)),
                pl.BlockSpec((oc_pad, 1), lambda b, si: (0, 0)),
                # Valid-lane mask column for the MXU-based statistics.
                pl.BlockSpec((s_tile, 1), lambda b, si: (si, 0)),
            ],
            # Whole-sample output block stays resident across the S axis (accumulator
            # pattern) and is written back once per sample after the final S step.
            out_specs=pl.BlockSpec((1, oc_pad, s_pad), lambda b, si: (b, 0, 0)),
            scratch_shapes=[pltpu.VMEM((oc_pad, 1), jnp.float32),
                            pltpu.VMEM((oc_pad, 1), jnp.float32)],
        ),
        compiler_params=pltpu.CompilerParams(
            dimension_semantics=("parallel", "arbitrary"),
            # v7x-safe: leave headroom below 64 MiB/TC physical VMEM (v5e/v6e have 128 MiB).
            vmem_limit_bytes=48 * 1024 * 1024,
        ),
        cost_estimate=cost,
    )(pat, w2, b2, msk)                                        # (n, OC_pad, S_pad)

    # Lane-dense layout: drop channel/lane padding and reshape, no transpose needed.
    return out[:, :oc, :spatial].reshape(n, oc, oh, ow)


def _reference_forward(x_nchw, weight_oihw, bias, stride):
    """Pure-JAX (f32) reference for verification."""
    xp = jnp.pad(x_nchw, ((0, 0), (0, 0), (1, 1), (1, 1)), mode="reflect")
    y = lax.conv_general_dilated(
        xp, weight_oihw, window_strides=(stride, stride), padding="VALID",
        dimension_numbers=("NCHW", "OIHW", "NCHW"),
    ) + bias.reshape(1, -1, 1, 1)
    mean = jnp.mean(y, axis=(2, 3), keepdims=True)
    var = jnp.mean((y - mean) ** 2, axis=(2, 3), keepdims=True)
    yn = (y - mean) * lax.rsqrt(var + 1e-5)
    return jnp.maximum(yn, 0.2 * yn)


if __name__ == "__main__":
    # Shapes consistent with the module: batch=2, in_channels=4, out_channels=8,
    # spatial=16, stride=2  ->  output (2, 8, 8, 8).
    N, C_IN, C_OUT, KS = 2, 4, 8, 4

    key = jax.random.PRNGKey(0)
    kx, kw_, kb = jax.random.split(key, 3)

    # Deterministic Conv2d-style uniform init (no checkpoint load).
    fan_in = C_IN * KS * KS
    bound = 1.0 / (fan_in ** 0.5)
    weight = jax.random.uniform(kw_, (C_OUT, C_IN, KS, KS), jnp.float32, -bound, bound)
    bias = jax.random.uniform(kb, (C_OUT,), jnp.float32, -bound, bound)

    # Main demo: stride=2 on 16x16 input.
    x = jax.random.normal(kx, (N, C_IN, 16, 16), dtype=jnp.float32)
    out = jax.block_until_ready(conv_block_forward(x, weight, bias, stride=2))
    ref = _reference_forward(x, weight, bias, 2)
    assert out.shape == (N, C_OUT, 8, 8), out.shape
    # bf16 MXU operands vs an f32 reference -> a few 1e-2 of slack.
    assert jnp.allclose(out, ref, atol=4e-2, rtol=4e-2), float(jnp.max(jnp.abs(out - ref)))

    # Exercise the multi-tile spatial-grid path (S = 256 -> two 128-lane tiles).
    x32 = jax.random.normal(jax.random.fold_in(kx, 1), (N, C_IN, 32, 32), dtype=jnp.float32)
    out32 = jax.block_until_ready(conv_block_forward(x32, weight, bias, stride=2, s_tile=128))
    ref32 = _reference_forward(x32, weight, bias, 2)
    assert out32.shape == (N, C_OUT, 16, 16), out32.shape
    assert jnp.allclose(out32, ref32, atol=4e-2, rtol=4e-2), float(jnp.max(jnp.abs(out32 - ref32)))

    # Stride=1 variant (as used by the last discriminator ConvBlock).
    out_s1 = jax.block_until_ready(conv_block_forward(x, weight, bias, stride=1))
    ref_s1 = _reference_forward(x, weight, bias, 1)
    assert out_s1.shape == (N, C_OUT, 15, 15), out_s1.shape
    assert jnp.allclose(out_s1, ref_s1, atol=4e-2, rtol=4e-2), float(jnp.max(jnp.abs(out_s1 - ref_s1)))

    print("KERNEL_OK")
</pallas_src>

<mosaic_0001>
module attributes {stable_mosaic.version = 11 : i64} {
  func.func @_convblock_kernel(%arg0: i32, %arg1: i32, %arg2: memref<1x64x128xbf16, #tpu.memory_space<vmem>>, %arg3: memref<8x64xbf16, #tpu.memory_space<vmem>>, %arg4: memref<8x1xf32, #tpu.memory_space<vmem>>, %arg5: memref<128x1xf32, #tpu.memory_space<vmem>>, %arg6: memref<1x8x128xf32, #tpu.memory_space<vmem>>, %arg7: memref<8x1xf32, #tpu.memory_space<vmem>>, %arg8: memref<8x1xf32, #tpu.memory_space<vmem>>) attributes {dimension_semantics = [#tpu.dimension_semantics<parallel>, #tpu.dimension_semantics<arbitrary>], iteration_bounds = array<i64: 2, 1>, scalar_prefetch = 0 : i64, scratch_operands = 2 : i64, tpu.core_type = #tpu.core_type<tc>, window_params = [{transform_indices = @transform_0, window_bounds = array<i64: 1, 64, 128>}, {pipeline_mode = #tpu.pipeline_mode<synchronous>, transform_indices = @transform_1, window_bounds = array<i64: 8, 64>}, {pipeline_mode = #tpu.pipeline_mode<synchronous>, transform_indices = @transform_2, window_bounds = array<i64: 8, 1>}, {transform_indices = @transform_3, window_bounds = array<i64: 128, 1>}, {transform_indices = @transform_4, window_bounds = array<i64: 1, 8, 128>}]} {
    %c0_i32 = arith.constant 0 : i32
    %0 = arith.cmpi eq, %arg1, %c0_i32 : i32
    %1 = arith.extui %0 : i1 to i32
    %c0_i32_0 = arith.constant 0 : i32
    %2 = arith.cmpi ne, %1, %c0_i32_0 : i32
    scf.if %2 {
      %cst_23 = arith.constant 0.000000e+00 : f32
      %29 = vector.broadcast %cst_23 : f32 to vector<8x1xf32>
      %c0_24 = arith.constant 0 : index
      %c0_25 = arith.constant 0 : index
      %30 = vector.load %arg7[%c0_24, %c0_25] : memref<8x1xf32, #tpu.memory_space<vmem>>, vector<8x1xf32>
      tpu.vector_store %arg7[%c0_24, %c0_25], %29 {strides = array<i32>} : memref<8x1xf32, #tpu.memory_space<vmem>>, vector<8x1xf32>,
      %cst_26 = arith.constant 0.000000e+00 : f32
      %31 = vector.broadcast %cst_26 : f32 to vector<8x1xf32>
      %c0_27 = arith.constant 0 : index
      %c0_28 = arith.constant 0 : index
      %32 = vector.load %arg8[%c0_27, %c0_28] : memref<8x1xf32, #tpu.memory_space<vmem>>, vector<8x1xf32>
      tpu.vector_store %arg8[%c0_27, %c0_28], %31 {strides = array<i32>} : memref<8x1xf32, #tpu.memory_space<vmem>>, vector<8x1xf32>,
    } else {
    }
    %c0 = arith.constant 0 : index
    %c0_1 = arith.constant 0 : index
    %3 = vector.load %arg3[%c0, %c0_1] : memref<8x64xbf16, #tpu.memory_space<vmem>>, vector<8x64xbf16>
    %c0_2 = arith.constant 0 : index
    %c0_3 = arith.constant 0 : index
    %c0_4 = arith.constant 0 : index
    %4 = vector.load %arg2[%c0_2, %c0_3, %c0_4] : memref<1x64x128xbf16, #tpu.memory_space<vmem>>, vector<1x64x128xbf16>
    %5 = vector.shape_cast %4 : vector<1x64x128xbf16> to vector<64x128xbf16>
    %cst = arith.constant dense<0.000000e+00> : vector<8x128xf32>
    %6 = tpu.matmul %3, %5, %cst {dimension_numbers = #tpu.dot_dimension_numbers<[1], [0], [0], [1], [0, 0, 1, 1], [], []>} : vector<8x64xbf16>, vector<64x128xbf16>, vector<8x128xf32> -> vector<8x128xf32>
    %c0_5 = arith.constant 0 : index
    %c0_6 = arith.constant 0 : index
    %7 = vector.load %arg5[%c0_5, %c0_6] : memref<128x1xf32, #tpu.memory_space<vmem>>, vector<128x1xf32>
    %c0_7 = arith.constant 0 : index
    %c0_8 = arith.constant 0 : index
    %8 = vector.load %arg7[%c0_7, %c0_8] : memref<8x1xf32, #tpu.memory_space<vmem>>, vector<8x1xf32>
    %cst_9 = arith.constant dense<0.000000e+00> : vector<8x1xf32>
    %9 = tpu.matmul %6, %7, %cst_9 {dimension_numbers = #tpu.dot_dimension_numbers<[1], [0], [0], [1], [0, 0, 1, 1], [], []>} : vector<8x128xf32>, vector<128x1xf32>, vector<8x1xf32> -> vector<8x1xf32>
    %10 = arith.addf %8, %9 : vector<8x1xf32>
    %c0_10 = arith.constant 0 : index
    %c0_11 = arith.constant 0 : index
    %11 = vector.load %arg7[%c0_10, %c0_11] : memref<8x1xf32, #tpu.memory_space<vmem>>, vector<8x1xf32>
    tpu.vector_store %arg7[%c0_10, %c0_11], %10 {strides = array<i32>} : memref<8x1xf32, #tpu.memory_space<vmem>>, vector<8x1xf32>,
    %c0_12 = arith.constant 0 : index
    %c0_13 = arith.constant 0 : index
    %12 = vector.load %arg8[%c0_12, %c0_13] : memref<8x1xf32, #tpu.memory_space<vmem>>, vector<8x1xf32>
    %13 = arith.mulf %6, %6 : vector<8x128xf32>
    %cst_14 = arith.constant dense<0.000000e+00> : vector<8x1xf32>
    %14 = tpu.matmul %13, %7, %cst_14 {dimension_numbers = #tpu.dot_dimension_numbers<[1], [0], [0], [1], [0, 0, 1, 1], [], []>} : vector<8x128xf32>, vector<128x1xf32>, vector<8x1xf32> -> vector<8x1xf32>
    %15 = arith.addf %12, %14 : vector<8x1xf32>
    %c0_15 = arith.constant 0 : index
    %c0_16 = arith.constant 0 : index
    %16 = vector.load %arg8[%c0_15, %c0_16] : memref<8x1xf32, #tpu.memory_space<vmem>>, vector<8x1xf32>
    tpu.vector_store %arg8[%c0_15, %c0_16], %15 {strides = array<i32>} : memref<8x1xf32, #tpu.memory_space<vmem>>, vector<8x1xf32>,
    %c128_i32 = arith.constant 128 : i32
    %17 = arith.muli %arg1, %c128_i32 : i32
    %18 = tpu.assume_multiple %17, 128 : i32
    %c0_17 = arith.constant 0 : index
    %c0_18 = arith.constant 0 : index
    %19 = vector.load %arg4[%c0_17, %c0_18] : memref<8x1xf32, #tpu.memory_space<vmem>>, vector<8x1xf32>
    %20 = vector.broadcast %19 : vector<8x1xf32> to vector<8x128xf32>
    %21 = arith.addf %6, %20 : vector<8x128xf32>
    %c0_19 = arith.constant 0 : index
    %c0_20 = arith.constant 0 : index
    %22 = arith.index_cast %18 : i32 to index
    %23 = vector.load %arg6[%c0_19, %c0_20, %22] : memref<1x8x128xf32, #tpu.memory_space<vmem>>, vector<1x8x128xf32>
    %24 = vector.shape_cast %23 : vector<1x8x128xf32> to vector<8x128xf32>
    %25 = vector.shape_cast %21 : vector<8x128xf32> to vector<1x8x128xf32>
    tpu.vector_store %arg6[%c0_19, %c0_20, %22], %25 {strides = array<i32>} : memref<1x8x128xf32, #tpu.memory_space<vmem>>, vector<1x8x128xf32>,
    %c0_i32_21 = arith.constant 0 : i32
    %26 = arith.cmpi eq, %arg1, %c0_i32_21 : i32
    %27 = arith.extui %26 : i1 to i32
    %c0_i32_22 = arith.constant 0 : i32
    %28 = arith.cmpi ne, %27, %c0_i32_22 : i32
    scf.if %28 {
      %c0_23 = arith.constant 0 : index
      %c0_24 = arith.constant 0 : index
      %29 = vector.load %arg7[%c0_23, %c0_24] : memref<8x1xf32, #tpu.memory_space<vmem>>, vector<8x1xf32>
      %cst_25 = arith.constant 1.562500e-02 : f32
      %30 = vector.broadcast %cst_25 : f32 to vector<8x1xf32>
      %31 = arith.mulf %29, %30 : vector<8x1xf32>
      %c0_26 = arith.constant 0 : index
      %c0_27 = arith.constant 0 : index
      %32 = vector.load %arg8[%c0_26, %c0_27] : memref<8x1xf32, #tpu.memory_space<vmem>>, vector<8x1xf32>
      %cst_28 = arith.constant 1.562500e-02 : f32
      %33 = vector.broadcast %cst_28 : f32 to vector<8x1xf32>
      %34 = arith.mulf %32, %33 : vector<8x1xf32>
      %35 = arith.mulf %31, %31 : vector<8x1xf32>
      %36 = arith.subf %34, %35 : vector<8x1xf32>
      %cst_29 = arith.constant 0.000000e+00 : f32
      %37 = vector.broadcast %cst_29 : f32 to vector<8x1xf32>
      %38 = arith.maximumf %36, %37 : vector<8x1xf32>
      %cst_30 = arith.constant 9.99999974E-6 : f32
      %39 = vector.broadcast %cst_30 : f32 to vector<8x1xf32>
      %40 = arith.addf %38, %39 : vector<8x1xf32>
      %41 = math.rsqrt %40 : vector<8x1xf32>
      %c0_31 = arith.constant 0 : index
      %c0_32 = arith.constant 0 : index
      %42 = vector.load %arg4[%c0_31, %c0_32] : memref<8x1xf32, #tpu.memory_space<vmem>>, vector<8x1xf32>
      %43 = arith.addf %31, %42 : vector<8x1xf32>
      %c0_33 = arith.constant 0 : index
      %c0_34 = arith.constant 0 : index
      %c0_35 = arith.constant 0 : index
      %44 = vector.load %arg6[%c0_33, %c0_34, %c0_35] : memref<1x8x128xf32, #tpu.memory_space<vmem>>, vector<1x8x128xf32>
      %45 = vector.shape_cast %44 : vector<1x8x128xf32> to vector<8x128xf32>
      %46 = vector.broadcast %43 : vector<8x1xf32> to vector<8x128xf32>
      %47 = arith.subf %45, %46 : vector<8x128xf32>
      %48 = vector.broadcast %41 : vector<8x1xf32> to vector<8x128xf32>
      %49 = arith.mulf %47, %48 : vector<8x128xf32>
      %cst_36 = arith.constant 2.000000e-01 : f32
      %50 = vector.broadcast %cst_36 : f32 to vector<8x128xf32>
      %51 = arith.mulf %50, %49 : vector<8x128xf32>
      %52 = arith.maximumf %49, %51 : vector<8x128xf32>
      %c0_37 = arith.constant 0 : index
      %c0_38 = arith.constant 0 : index
      %c0_39 = arith.constant 0 : index
      %53 = vector.load %arg6[%c0_37, %c0_38, %c0_39] : memref<1x8x128xf32, #tpu.memory_space<vmem>>, vector<1x8x128xf32>
      %54 = vector.shape_cast %53 : vector<1x8x128xf32> to vector<8x128xf32>
      %55 = vector.shape_cast %52 : vector<8x128xf32> to vector<1x8x128xf32>
      tpu.vector_store %arg6[%c0_37, %c0_38, %c0_39], %55 {strides = array<i32>} : memref<1x8x128xf32, #tpu.memory_space<vmem>>, vector<1x8x128xf32>,
    } else {
    }
    return
  }
  func.func @transform_0(%arg0: i32, %arg1: i32) -> (i32, i32, i32) {
    %c0_i32 = arith.constant 0 : i32
    %c0_i32_0 = arith.constant 0 : i32
    return %arg0, %c0_i32, %arg1 : i32, i32, i32
  }
  func.func @transform_1(%arg0: i32, %arg1: i32) -> (i32, i32) {
    %c0_i32 = arith.constant 0 : i32
    %c0_i32_0 = arith.constant 0 : i32
    %c0_i32_1 = arith.constant 0 : i32
    return %c0_i32, %c0_i32_0 : i32, i32
  }
  func.func @transform_2(%arg0: i32, %arg1: i32) -> (i32, i32) {
    %c0_i32 = arith.constant 0 : i32
    %c0_i32_0 = arith.constant 0 : i32
    %c0_i32_1 = arith.constant 0 : i32
    return %c0_i32, %c0_i32_0 : i32, i32
  }
  func.func @transform_3(%arg0: i32, %arg1: i32) -> (i32, i32) {
    %c0_i32 = arith.constant 0 : i32
    %c0_i32_0 = arith.constant 0 : i32
    return %arg1, %c0_i32 : i32, i32
  }
  func.func @transform_4(%arg0: i32, %arg1: i32) -> (i32, i32, i32) {
    %c0_i32 = arith.constant 0 : i32
    %c0_i32_0 = arith.constant 0 : i32
    %c0_i32_1 = arith.constant 0 : i32
    return %arg0, %c0_i32, %c0_i32_0 : i32, i32, i32
  }
}

</mosaic_0001>

<bundles_post_ra>
// kernel: conv_block_forward.1
= control target key start
LH: loop header
LB: loop body
LE: loop exit
PB: predicated region body
PF: predicated region fallthrough
CT: control target
= control target key end

     0   :  { %s891_s15 = smov 0   ;;  %s893_s16 = smov 0   ;;  %s1018_s0 = inlined_call_operand.vmem [shape: bf16[2,64,128], index: 0, kind: input, shape index: {}]   ;;  %s1019_s1 = inlined_call_operand.vmem [shape: bf16[8,64], index: 1, kind: input, shape index: {}]   ;;  %s1020_s2 = inlined_call_operand.vmem [shape: f32[8,1], index: 2, kind: input, shape index: {}]   ;;  %s1021_s3 = inlined_call_operand.vmem [shape: f32[128,1], index: 3, kind: input, shape index: {}]   ;;  %s1022_s4 = inlined_call_operand.vmem [shape: f32[2,8,128], index: 4, kind: output, shape index: {}]  }
   0x1   :  { %s895_s17 = smov 0  }
   0x2 LB: > { %s26_s18 = sadd.s32 1, %s856_s16  ;;  %p621_p0 = scmp.ge.s32.totalorder %s860_s17, 1  ;;  %s860_s17 = sphi %s895_s17, %s14_s17   ;;  %s856_s16 = sphi %s893_s16, %s1024_s16   ;;  %s852_s15 = sphi %s891_s15, %s1023_s15  }
   0x3   : > { %p28_p1 = scmp.ge.s32.totalorder %s26_s18, 2  ;;  %p190_p2 = scmp.lt.s32.totalorder %s860_s17, 3 }
   0x5   : > { %s1026_s18 = smov (%p28_p1, %s26_s18), 0  ;;  %p191_p3 = pnand %p621_p0, %p190_p2 }
   0x6   : > { %p223_p4 = scmp.lt.s32.totalorder (!%p191_p3), %s852_s15, 1  ;;  %v862_v0 = vmov (!%p191_p3), 0.0   ;;  %vm863_vm0 = vmmov (!%p191_p3), 0   ;;  %v915_v1 = vld [vmem:[%s1020_s2] sm:$0xff] (!%p191_p3)  ;;  %v327_v3 = vld [vmem:[%s1021_s3 + $0x8] sm:$0xff] (!%p191_p3)  ;;  %v864_v4 = vmov (!%p191_p3), 0  }
   0x7   : > { %194 = sbr.rel (%p191_p3) target bundleno = 623 (0x26f), region = 36  ;;  %672 = vmatprep.subr.bf16.mxu0 (!%p191_p3), %v862_v0  ;;  %680 = vmatprep.mubr.msk.bf16.mxu0 (!%p191_p3), %vm863_vm0, %v862_v0  ;;  %v326_v2 = vld [vmem:[%s1021_s3] sm:$0xff] (!%p191_p3)  ;;  %v865_v5 = vmov (!%p191_p3), 0.0|0.0   ;;  %v328_v7 = vld [vmem:[%s1021_s3 + $0x10] sm:$0xff] (!%p191_p3)  ;;  %v329_v8 = vld [vmem:[%s1021_s3 + $0x18] sm:$0xff] (!%p191_p3)  ;;  %vm282_vm1 = vcmask (!%p191_p3), 523264  }
   0x8   : > { %830 = vset.pattern.permute.xlu0 (!%p191_p3), %v864_v4  ;;  %754 = vmatprep.subr.bf16.mxu1 (!%p191_p3), %v865_v5  ;;  %v755_v6 = vpack.c.bf16 (!%p191_p3), %v327_v3, %v326_v2  ;;  %v758_v9 = vpack.c.bf16 (!%p191_p3), %v329_v8, %v328_v7  ;;  %v330_v10 = vld [vmem:[%s1021_s3 + $0x20] sm:$0xff] (!%p191_p3)  ;;  %v331_v11 = vld [vmem:[%s1021_s3 + $0x28] sm:$0xff] (!%p191_p3)  ;;  %v332_v13 = vld [vmem:[%s1021_s3 + $0x30] sm:$0xff] (!%p191_p3)  ;;  %vm246_vm2 = vcmask (!%p191_p3), 7168  }
   0x9   : > { %494 = vperm.xlu0 (!%p191_p3), %830, %v915_v1   ;;  %716 = vmatprep.mubr.msk.f32.mxu1 (!%p191_p3), %vm863_vm0, %v862_v0  ;;  %v761_v15 = vpack.c.bf16 (!%p191_p3), %v331_v11, %v330_v10  ;;  %v333_v16 = vld [vmem:[%s1021_s3 + $0x38] sm:$0xff] (!%p191_p3)  ;;  %v334_v19 = vld [vmem:[%s1021_s3 + $0x40] sm:$0xff] (!%p191_p3)  ;;  %v335_v20 = vld [vmem:[%s1021_s3 + $0x48] sm:$0xff] (!%p191_p3)  ;;  %247 = vst.msk [vmem:[#allocation2] sm:$0xff] (!%p191_p3), %vm246_vm2, %v862_v0 }
   0xa   : > { %756 = vmatpush3.bf16.msra.mxu1 (!%p191_p3), %v755_v6  ;;  %831 = vset.pattern.permute.xlu1 (!%p191_p3), %v864_v4  ;;  %v764_v18 = vpack.c.bf16 (!%p191_p3), %v333_v16, %v332_v13  ;;  %v767_v22 = vpack.c.bf16 (!%p191_p3), %v335_v20, %v334_v19  ;;  %v336_v23 = vld [vmem:[%s1021_s3 + $0x50] sm:$0xff] (!%p191_p3)  ;;  %v337_v24 = vld [vmem:[%s1021_s3 + $0x58] sm:$0xff] (!%p191_p3)  ;;  %v249_v25 = vld [vmem:[%s1019_s1] sm:$0xf] (!%p191_p3)  ;;  %248 = vst.msk [vmem:[#allocation3] sm:$0xff] (!%p191_p3), %vm246_vm2, %v862_v0 }
   0xb   : > { %757 = vmatprep.subr.bf16.mxu1 (!%p191_p3), %v865_v5  ;;  %v770_v26 = vpack.c.bf16 (!%p191_p3), %v337_v24, %v336_v23  ;;  %v338_v27 = vld [vmem:[%s1021_s3 + $0x60] sm:$0xff] (!%p191_p3)  ;;  %v339_v28 = vld [vmem:[%s1021_s3 + $0x68] sm:$0xff] (!%p191_p3)  ;;  %v340_v30 = vld [vmem:[%s1021_s3 + $0x70] sm:$0xff] (!%p191_p3) }
   0xc   : > { %v773_v29 = vpack.c.bf16 (!%p191_p3), %v339_v28, %v338_v27  ;;  %v341_v31 = vld [vmem:[%s1021_s3 + $0x78] sm:$0xff] (!%p191_p3) }
   0xd   : > { %v776_v32 = vpack.c.bf16 (!%p191_p3), %v341_v31, %v340_v30 }
   0xe   : > { %s1028_s15 = smov (!%p223_p4, %s852_s15), 1  ;;  %759 = vmatpush3.bf16.msra.mxu1 %v758_v9 }
   0xf   : > { %s632_s29 = sshll.u32 %s1028_s15, 5  ;;  %760 = vmatprep.subr.bf16.mxu1 %v865_v5  ;;  %s624_s11 = sshll.u32 %s1028_s15, 3 }
  0x10   : > { %s230_s6 = scalar_lea.vmem %s1018_s0, %s632_s29  ;;  %v342_v38 = vld [vmem:[#allocation2] sm:$0xff]  ;;  %s240_s14 = scalar_lea.vmem %s1022_s4, %s624_s11 }
  0x11   : > { %v832_v12 = vld [vmem:[%s230_s6] sm:$0xff]   ;;  %v833_v14 = vld [vmem:[%s230_s6 + $0x8] sm:$0xff]   ;;  %v834_v17 = vld [vmem:[%s230_s6 + $0x10] sm:$0xff]  }
  0x12   : > { %673 = vmatpush3.bf16.msra.mxu0 %v832_v12  ;;  %762 = vmatpush3.bf16.msra.mxu1 %v761_v15  ;;  %v835_v21 = vld [vmem:[%s230_s6 + $0x18] sm:$0xff]   ;;  %v416_v40 = vld [vmem:[#allocation3] sm:$0xff] }
  0x13   : > { %674 = vmatprep.subr.bf16.mxu0 %v862_v0  ;;  %763 = vmatprep.subr.bf16.mxu1 %v865_v5 }
  0x16   : > { %675 = vmatpush3.bf16.msra.mxu0 %v833_v14  ;;  %765 = vmatpush3.bf16.msra.mxu1 %v764_v18 }
  0x17   : > { %676 = vmatprep.subr.bf16.mxu0 %v862_v0  ;;  %766 = vmatprep.subr.bf16.mxu1 %v865_v5 }
  0x1a   : > { %677 = vmatpush3.bf16.msra.mxu0 %v834_v17  ;;  %768 = vmatpush3.bf16.msra.mxu1 %v767_v22 }
  0x1b   : > { %678 = vmatprep.subr.bf16.mxu0 %v862_v0  ;;  %769 = vmatprep.subr.bf16.mxu1 %v865_v5 }
  0x1e   : > { %679 = vmatpush3.bf16.msra.mxu0 %v835_v21  ;;  %771 = vmatpush3.bf16.msra.mxu1 %v770_v26 }
  0x1f   : > { %778 = vmatprep.subr.bf16.mxu0 %v865_v5  ;;  %772 = vmatprep.subr.bf16.mxu1 %v865_v5 }
  0x21   : > { %681 = vmatmul.mubr.msk.bf16.vlgmr.msra.gmra.mrb[0].mxu0 %vm282_vm1, %v249_v25 }
  0x22   : > { %780 = vmatpush3.bf16.msra.mxu0 %v755_v6  ;;  %751 = vmatprep.mubr.msk.f32.mxu0 %vm863_vm0, %v862_v0 }
  0x23   : > { %781 = vmatprep.subr.bf16.mxu0 %v865_v5  ;;  %774 = vmatpush3.bf16.msra.mxu1 %v773_v29 }
  0x24   : > { %775 = vmatprep.subr.bf16.mxu1 %v865_v5 }
  0x26   : > { %783 = vmatpush3.bf16.msra.mxu0 %v758_v9 }
  0x27   : > { %784 = vmatprep.subr.bf16.mxu0 %v865_v5  ;;  %777 = vmatpush3.bf16.msra.mxu1 %v776_v32 }
  0x2a   : > { %786 = vmatpush3.bf16.msra.mxu0 %v761_v15 }
  0x2b   : > { %787 = vmatprep.subr.bf16.mxu0 %v865_v5 }
  0x2e   : > { %789 = vmatpush3.bf16.msra.mxu0 %v764_v18 }
  0x2f   : > { %790 = vmatprep.subr.bf16.mxu0 %v865_v5 }
  0x32   : > { %792 = vmatpush3.bf16.msra.mxu0 %v767_v22 }
  0x33   : > { %793 = vmatprep.subr.bf16.mxu0 %v865_v5 }
  0x36   : > { %795 = vmatpush3.bf16.msra.mxu0 %v770_v26 }
  0x37   : > { %796 = vmatprep.subr.bf16.mxu0 %v865_v5 }
  0x3a   : > { %798 = vmatpush3.bf16.msra.mxu0 %v773_v29 }
  0x3b   : > { %799 = vmatprep.subr.bf16.mxu0 %v865_v5 }
  0x3e   : > { %801 = vmatpush3.bf16.msra.mxu0 %v776_v32 }
  0x88   : > { %v495_v56 = vpop.permute.xlu0 %494 }
  0xf4   : > { %v320_v33 = vpop.f32.mrb[0].mxu0 }
  0xf5   : > { %v417_v34 = vmul.f32 %v320_v33, %v320_v33  ;;  %v682_v35 = vpop.f32.mrb[1].mxu0  ;;  %717 = vmatmul.mubr.f32.vlgmr.msra.gmra.mrb[0].mxu1 %v320_v33  ;;  %v497_v58 = vadd.f32 %v495_v56, %v320_v33 }
  0xf6   : > { %v323_v36 = vpop.f32.mrb[2].mxu0 }
  0xf7   : > { %v683_v37 = vpop.f32.mrb[3].mxu0  ;;  %752 = vmatmul.mubr.f32.vlgmr.msra.gmra.mrb[4].mxu0 %v417_v34 }
 0x1c8   : > { %v409_v39 = vpop.f32.mrb[0].mxu1 }
 0x1c9   : > { %v413_v41 = vadd.f32 %v409_v39, %v342_v38  ;;  %v718_v42 = vpop.f32.mrb[1].mxu1 }
 0x1ca   : > { %v484_v43 = vpop.f32.mrb[4].mxu0 }
 0x1cb   : > { %415 = vst.msk [vmem:[#allocation2] sm:$0xff] %vm246_vm2, %v413_v41  ;;  %v488_v44 = vadd.f32 %v484_v43, %v416_v40  ;;  %v753_v45 = vpop.f32.mrb[5].mxu0 }
 0x1cd   : > { %489 = vst.msk [vmem:[#allocation3] sm:$0xff] %vm246_vm2, %v488_v44 }
 0x1d2   : > { %v505_v46 = vld [vmem:[#allocation2] sm:$0xff] }
 0x1d3   : > { %v506_v47 = vmul.f32 0.015625, %v505_v46 }
 0x1d4   : > { %v507_v48 = vld [vmem:[#allocation3] sm:$0xff] }
 0x1d5   : > { %v515_v49 = vadd.f32 %v506_v47, %v915_v1  ;;  %v508_v50 = vmul.f32 0.015625, %v507_v48  ;;  %v509_v51 = vmul.f32 %v506_v47, %v506_v47 }
 0x1d7   : > { %519 = vperm.xlu0 %830, %v515_v49   ;;  %v510_v52 = vsub.f32 %v508_v50, %v509_v51 }
 0x1d9   : > { %v511_v53 = vmax.f32 %v510_v52, 0.0 }
 0x1db   : > { %v512_v54 = vadd.f32 1e-05, %v511_v53 }
 0x1dd   : > { %836 = vrsqrt.f32 %v512_v54 }
 0x1e7   : > { %v837_v55 = vpop.eup %836 }
 0x1e8   : > { %525 = vperm.xlu1 %831, %v837_v55  }
 0x256   : > { %v520_v57 = vpop.permute.xlu0 %519 }
 0x257   : > { %v522_v59 = vsub.f32 %v497_v58, %v520_v57 }
 0x267   : > { %v526_v60 = vpop.permute.xlu1 %525 }
 0x268   : > { %v528_v61 = vmul.f32 %v526_v60, %v522_v59 }
 0x26a   : > { %v529_v62 = vmul.f32 0.2, %v528_v61 }
 0x26c   : > { %v530_v63 = vmax.f32 %v528_v61, %v529_v62 }
 0x26e   : > { %531 = vst [vmem:[%s240_s14] sm:$0xff] %v530_v63 }
 0x26f PF: > { %s14_s17 = sadd.s32 1, %s860_s17   ;;  %s1023_s15 = smov %s856_s16 }
 0x270   : > { %p11_p5 = scmp.ge.s32.totalorder %s14_s17, 4   ;;  %s1024_s16 = smov %s1026_s18 }
 0x272   :  { %13 = sbr.rel (!%p11_p5) target bundleno = 2 (0x2), region = 78 }

</bundles_post_ra>
